<compile_context>
chip_gen: v5e
topology: v5e:2x2
jax: 0.10.0
libtpu: 0.0.40
codegen_flags: <defaults>
</compile_context>

<pallas_src>
import jax
import jax.numpy as jnp
from jax.experimental import pallas as pl
from jax.experimental.pallas import tpu as pltpu


def _round_up(x, m):
    return ((x + m - 1) // m) * m


def _round_down(x, m):
    return (x // m) * m


def _mlp_kernel(x_ref, w1_ref, b1_ref, w2_ref, b2_ref, o_ref):
    # fc1: cast x to bf16 in-kernel (HBM carries x once, as f32), f32 accum.
    x = x_ref[...].astype(jnp.bfloat16)
    h = jnp.dot(x, w1_ref[...], preferred_element_type=jnp.float32)
    # Bias-add + ReLU in f32 (v5e has no bf16 VALU; f32 keeps the VPU path fast).
    h = jnp.maximum(h + b1_ref[...], 0.0)
    # fc2: downcast activations to bf16 for the MXU, accumulate in f32.
    out = jnp.dot(h.astype(jnp.bfloat16), w2_ref[...],
                  preferred_element_type=jnp.float32)
    o_ref[...] = (out + b2_ref[...]).astype(o_ref.dtype)


def gene_regressor_forward(x, w1, b1, w2, b2, *, tile_b=8192):
    """Fused fc1 -> ReLU -> fc2.

    x : [B, IN]  float32
    w1: [IN, HID]   b1: [HID] or [1, HID]
    w2: [HID, OUT]  b2: [OUT] or [1, OUT]
    returns [B, OUT] float32
    """
    B, IN = x.shape
    HID = w1.shape[1]
    OUT = w2.shape[1]

    # ---- tile_b sizing ---------------------------------------------------
    # Per-row VMEM working set (bytes): x f32 (double-buffered) + in-kernel
    # bf16 x copy + h f32 + h bf16 + out f32 temp + out tile (double-buffered).
    bytes_per_row = (2 * IN * 4) + (IN * 2) + (HID * 4) + (HID * 2) \
        + (OUT * 4) + (2 * OUT * 4)
    weight_bytes = 2 * (IN * HID * 2 + HID * OUT * 2 + HID * 4 + OUT * 4)
    vmem_target = 20 * 1024 * 1024  # fits v5e 16 MiB default + margin via limit below
    max_rows = max(16, _round_down((vmem_target - weight_bytes) // bytes_per_row, 16))

    tile_b = min(tile_b, max_rows)
    # Keep >= 2 grid steps when the batch allows it, so the "parallel" batch
    # axis can shard across both TensorCores on v7x (no-op on v5e/v6e).
    tile_b = min(tile_b, _round_up(pl.cdiv(B, 2), 16))
    # Sublane multiple (8 suffices for the f32 x load; 16-aligned when large).
    tile_b = max(8, _round_up(min(tile_b, B), 8))

    grid = (pl.cdiv(B, tile_b),)  # ragged last block is masked by Pallas

    w1_b = w1.astype(jnp.bfloat16)
    w2_b = w2.astype(jnp.bfloat16)
    b1_f = jnp.asarray(b1, jnp.float32).reshape(1, HID)
    b2_f = jnp.asarray(b2, jnp.float32).reshape(1, OUT)

    # Explicit VMEM budget (covers v7x's 64 MiB physical / 32 MiB default).
    vmem_limit = int(tile_b * bytes_per_row + weight_bytes + (4 << 20))

    cost = pl.CostEstimate(
        flops=2 * B * IN * HID + 2 * B * HID * OUT,
        transcendentals=0,
        bytes_accessed=(B * IN * 4 + B * OUT * 4
                        + IN * HID * 2 + HID * OUT * 2 + HID * 4 + OUT * 4),
    )

    return pl.pallas_call(
        _mlp_kernel,
        out_shape=jax.ShapeDtypeStruct((B, OUT), jnp.float32),
        grid_spec=pl.GridSpec(
            grid=grid,
            in_specs=[
                pl.BlockSpec((tile_b, IN), lambda i: (i, 0)),   # x: batch-tiled
                pl.BlockSpec((IN, HID), lambda i: (0, 0)),      # w1: resident
                pl.BlockSpec((1, HID), lambda i: (0, 0)),       # b1: resident
                pl.BlockSpec((HID, OUT), lambda i: (0, 0)),     # w2: resident
                pl.BlockSpec((1, OUT), lambda i: (0, 0)),       # b2: resident
            ],
            out_specs=pl.BlockSpec((tile_b, OUT), lambda i: (i, 0)),
        ),
        compiler_params=pltpu.CompilerParams(
            dimension_semantics=("parallel",),
            vmem_limit_bytes=vmem_limit,
        ),
        cost_estimate=cost,
    )(x.astype(jnp.float32), w1_b, b1_f, w2_b, b2_f)


if __name__ == "__main__":
    # Small shapes consistent with the module: input_dim=32, hidden_dim=64,
    # output_dim=16, batch=16.
    B, IN, HID, OUT = 16, 32, 64, 16

    key = jax.random.PRNGKey(0)
    kx, k1, k2, k3, k4 = jax.random.split(key, 5)

    x = jax.random.normal(kx, (B, IN), dtype=jnp.float32)
    w1 = jax.random.normal(k1, (IN, HID), dtype=jnp.float32) * 0.1
    b1 = jax.random.normal(k2, (1, HID), dtype=jnp.float32) * 0.1
    w2 = jax.random.normal(k3, (HID, OUT), dtype=jnp.float32) * 0.1
    b2 = jax.random.normal(k4, (1, OUT), dtype=jnp.float32) * 0.1

    # tile_b=8 exercises a multi-step, double-buffered grid at toy shapes;
    # the production default is 8192 (auto-clamped to the VMEM budget / batch).
    out = gene_regressor_forward(x, w1, b1, w2, b2, tile_b=8)
    out = jax.block_until_ready(out)
    assert out.shape == (B, OUT)

    # Also run the default (single big tile) path once.
    out_big = jax.block_until_ready(gene_regressor_forward(x, w1, b1, w2, b2))
    assert jnp.allclose(out, out_big, atol=1e-6, rtol=1e-6)

    # Loose check against the pure-f32 PyTorch-equivalent reference
    # (bf16 MXU inputs introduce ~0.4% relative rounding).
    ref_f32 = jnp.maximum(x @ w1 + b1, 0.0) @ w2 + b2
    assert jnp.allclose(out, ref_f32, atol=5e-2, rtol=5e-2)

    # Tight check against a reference using the same bf16-in / f32-accumulate
    # MXU path as the kernel.
    h_ref = jnp.maximum(
        jnp.dot(x.astype(jnp.bfloat16), w1.astype(jnp.bfloat16),
                preferred_element_type=jnp.float32) + b1, 0.0)
    ref_bf16 = jnp.dot(h_ref.astype(jnp.bfloat16), w2.astype(jnp.bfloat16),
                       preferred_element_type=jnp.float32) + b2
    assert jnp.allclose(out, ref_bf16, atol=1e-3, rtol=1e-3)

    print("KERNEL_OK")
</pallas_src>

<mosaic_0001>
module attributes {stable_mosaic.version = 11 : i64} {
  func.func @_mlp_kernel(%arg0: i32, %arg1: memref<8x32xf32, #tpu.memory_space<vmem>>, %arg2: memref<32x64xbf16, #tpu.memory_space<vmem>>, %arg3: memref<1x64xf32, #tpu.memory_space<vmem>>, %arg4: memref<64x16xbf16, #tpu.memory_space<vmem>>, %arg5: memref<1x16xf32, #tpu.memory_space<vmem>>, %arg6: memref<8x16xf32, #tpu.memory_space<vmem>>) attributes {dimension_semantics = [#tpu.dimension_semantics<parallel>], iteration_bounds = array<i64: 2>, scalar_prefetch = 0 : i64, scratch_operands = 0 : i64, tpu.core_type = #tpu.core_type<tc>, window_params = [{transform_indices = @transform_0, window_bounds = array<i64: 8, 32>}, {pipeline_mode = #tpu.pipeline_mode<synchronous>, transform_indices = @transform_1, window_bounds = array<i64: 32, 64>}, {pipeline_mode = #tpu.pipeline_mode<synchronous>, transform_indices = @transform_2, window_bounds = array<i64: 1, 64>}, {pipeline_mode = #tpu.pipeline_mode<synchronous>, transform_indices = @transform_3, window_bounds = array<i64: 64, 16>}, {pipeline_mode = #tpu.pipeline_mode<synchronous>, transform_indices = @transform_4, window_bounds = array<i64: 1, 16>}, {transform_indices = @transform_5, window_bounds = array<i64: 8, 16>}]} {
    %c0 = arith.constant 0 : index
    %c0_0 = arith.constant 0 : index
    %0 = vector.load %arg1[%c0, %c0_0] : memref<8x32xf32, #tpu.memory_space<vmem>>, vector<8x32xf32>
    %1 = arith.truncf %0 : vector<8x32xf32> to vector<8x32xbf16>
    %c0_1 = arith.constant 0 : index
    %c0_2 = arith.constant 0 : index
    %2 = vector.load %arg2[%c0_1, %c0_2] : memref<32x64xbf16, #tpu.memory_space<vmem>>, vector<32x64xbf16>
    %cst = arith.constant dense<0.000000e+00> : vector<8x64xf32>
    %3 = tpu.matmul %1, %2, %cst {dimension_numbers = #tpu.dot_dimension_numbers<[1], [0], [0], [1], [0, 0, 1, 1], [], []>} : vector<8x32xbf16>, vector<32x64xbf16>, vector<8x64xf32> -> vector<8x64xf32>
    %c0_3 = arith.constant 0 : index
    %c0_4 = arith.constant 0 : index
    %4 = vector.load %arg3[%c0_3, %c0_4] : memref<1x64xf32, #tpu.memory_space<vmem>>, vector<1x64xf32>
    %5 = vector.broadcast %4 : vector<1x64xf32> to vector<8x64xf32>
    %6 = arith.addf %3, %5 : vector<8x64xf32>
    %cst_5 = arith.constant 0.000000e+00 : f32
    %7 = vector.broadcast %cst_5 : f32 to vector<8x64xf32>
    %8 = arith.maximumf %6, %7 : vector<8x64xf32>
    %9 = arith.truncf %8 : vector<8x64xf32> to vector<8x64xbf16>
    %c0_6 = arith.constant 0 : index
    %c0_7 = arith.constant 0 : index
    %10 = vector.load %arg4[%c0_6, %c0_7] : memref<64x16xbf16, #tpu.memory_space<vmem>>, vector<64x16xbf16>
    %cst_8 = arith.constant dense<0.000000e+00> : vector<8x16xf32>
    %11 = tpu.matmul %9, %10, %cst_8 {dimension_numbers = #tpu.dot_dimension_numbers<[1], [0], [0], [1], [0, 0, 1, 1], [], []>} : vector<8x64xbf16>, vector<64x16xbf16>, vector<8x16xf32> -> vector<8x16xf32>
    %c0_9 = arith.constant 0 : index
    %c0_10 = arith.constant 0 : index
    %12 = vector.load %arg5[%c0_9, %c0_10] : memref<1x16xf32, #tpu.memory_space<vmem>>, vector<1x16xf32>
    %13 = vector.broadcast %12 : vector<1x16xf32> to vector<8x16xf32>
    %14 = arith.addf %11, %13 : vector<8x16xf32>
    %c0_11 = arith.constant 0 : index
    %c0_12 = arith.constant 0 : index
    %15 = vector.load %arg6[%c0_11, %c0_12] : memref<8x16xf32, #tpu.memory_space<vmem>>, vector<8x16xf32>
    tpu.vector_store %arg6[%c0_11, %c0_12], %14 {strides = array<i32>} : memref<8x16xf32, #tpu.memory_space<vmem>>, vector<8x16xf32>,
    return
  }
  func.func @transform_0(%arg0: i32) -> (i32, i32) {
    %c0_i32 = arith.constant 0 : i32
    %c0_i32_0 = arith.constant 0 : i32
    return %arg0, %c0_i32 : i32, i32
  }
  func.func @transform_1(%arg0: i32) -> (i32, i32) {
    %c0_i32 = arith.constant 0 : i32
    %c0_i32_0 = arith.constant 0 : i32
    %c0_i32_1 = arith.constant 0 : i32
    return %c0_i32, %c0_i32_0 : i32, i32
  }
  func.func @transform_2(%arg0: i32) -> (i32, i32) {
    %c0_i32 = arith.constant 0 : i32
    %c0_i32_0 = arith.constant 0 : i32
    %c0_i32_1 = arith.constant 0 : i32
    return %c0_i32, %c0_i32_0 : i32, i32
  }
  func.func @transform_3(%arg0: i32) -> (i32, i32) {
    %c0_i32 = arith.constant 0 : i32
    %c0_i32_0 = arith.constant 0 : i32
    %c0_i32_1 = arith.constant 0 : i32
    return %c0_i32, %c0_i32_0 : i32, i32
  }
  func.func @transform_4(%arg0: i32) -> (i32, i32) {
    %c0_i32 = arith.constant 0 : i32
    %c0_i32_0 = arith.constant 0 : i32
    %c0_i32_1 = arith.constant 0 : i32
    return %c0_i32, %c0_i32_0 : i32, i32
  }
  func.func @transform_5(%arg0: i32) -> (i32, i32) {
    %c0_i32 = arith.constant 0 : i32
    %c0_i32_0 = arith.constant 0 : i32
    return %arg0, %c0_i32 : i32, i32
  }
}

</mosaic_0001>

<bundles_post_ra>
// kernel: tpu_custom_call.1
= control target key start
LH: loop header
LB: loop body
LE: loop exit
PB: predicated region body
PF: predicated region fallthrough
CT: control target
= control target key end

     0   :  { %10 = vsyncpa [#allocation3], 0  ;;  %s678_s0 = inlined_call_operand.vmem [shape: f32[16,32], index: 0, kind: input, shape index: {}]   ;;  %s679_s1 = inlined_call_operand.vmem [shape: bf16[32,64], index: 1, kind: input, shape index: {}]   ;;  %s680_s2 = inlined_call_operand.vmem [shape: f32[1,64], index: 2, kind: input, shape index: {}]   ;;  %s681_s3 = inlined_call_operand.vmem [shape: bf16[64,16], index: 3, kind: input, shape index: {}]   ;;  %s682_s4 = inlined_call_operand.vmem [shape: f32[1,16], index: 4, kind: input, shape index: {}]   ;;  %s683_s5 = inlined_call_operand.hbm [shape: f32[16,16], index: 5, kind: output, shape index: {}]  }
   0x1   :  { %12 = vsyncpa [#allocation3 + $0x1], 0  ;;  %s569_s18 = smov 0   ;;  %s571_s19 = smov 0  }
   0x2   :  { %s573_s20 = smov 0   ;;  %s575_s21 = smov 0  }
   0x3 LB: > { %s590_s22 = sadd.s32 4294967295, %s537_s21   ;;  %s392_s23 = sadd.s32 4294967294, %s537_s21   ;;  %s537_s21 = sphi %s575_s21, %s689_s21   ;;  %s533_s20 = sphi %s573_s20, %s688_s20   ;;  %s529_s19 = sphi %s571_s19, %s687_s19   ;;  %s525_s18 = sphi %s569_s18, %s686_s18  }
   0x4   : > { %s594_s24 = sadd.s32 1, %s537_s21   ;;  %s135_s25 = sadd.s32 1, %s533_s20 }
   0x5   : > { %s132_s26 = ssub.s32 %s537_s21, %s594_s24  ;;  %p145_p0 = scmp.ne.s32.totalorder %s533_s20, %s529_s19 }
   0x6   : > { %p133_p1 = scmp.eq.s32.totalorder %s132_s26, 0  ;;  %p146_p2 = scmp.eq.s32.totalorder %s590_s22, 1 }
   0x7   : > { %p151_p3 = scmp.ne.s32.totalorder %s529_s19, %s525_s18  ;;  %p152_p4 = scmp.eq.s32.totalorder %s392_s23, 1 }
   0x8   : > { %s605_s27 = scalar_select %p133_p1, %s533_s20, %s135_s25  }
   0x9   : > { %p607_p5 = por %p146_p2, %p145_p0  ;;  %p611_p6 = por %p152_p4, %p151_p3 }
   0xa   : > { %p395_p7 = scmp.ge.s32.totalorder %s537_s21, 1  ;;  %p189_p8 = scmp.lt.s32.totalorder %s537_s21, 3 }
   0xc   : > { %p190_p9 = pnand %p395_p7, %p189_p8 }
   0xd   : > { %p216_p10 = scmp.lt.s32.totalorder (!%p190_p9), %s590_s22, 1  ;;  %s213_s8 = sand.u32 (!%p190_p9), 1, %s529_s19  }
   0xe   : > { %193 = sbr.rel (%p190_p9) target bundleno = 293 (0x125), region = 40  ;;  %s425_s9 = sshll.u32 (!%p190_p9), %s590_s22, 3 }
   0xf   : > { %s396_s10 = sshll.u32 (!%p190_p9), %s213_s8, 3  ;;  %s328_s13 = scalar_lea.hbm (!%p190_p9), %s683_s5, %s425_s9 }
  0x10   : > { %s215_s16 = scalar_lea.vmem (!%p190_p9), [#allocation2], %s396_s10  ;;  %s332_s23 = sshll.u32 (!%p190_p9), %s328_s13, 4  ;;  %s333_s23 = int_to_ptr.hbm [resolvable:$true] %s332_s23 }
  0x11   : > { %s489_s25 = sshra.s32 (!%p190_p9), %s333_s23, 4  ;;  %s495_s7 = scalar_lea.hbm (!%p190_p9), %s683_s5, 16  ;;  %s490_s25 = int_to_ptr.hbm [resolvable:$true] %s489_s25 }
  0x12   : > { %s491_s26 = scalar_lea.hbm (!%p190_p9), %s490_s25, 8  ;;  %p496_p0 = scmp.lt.s32.totalorder (!%p190_p9), %s490_s25, %s683_s5 }
  0x13   : > { %v429_v0 = vld [vmem:[%s679_s1 + $0x8] sm:$0xff]  ;;  %v433_v1 = vld [vmem:[%s681_s3 + $0x18] sm:$0xff]  ;;  %v428_v2 = vld [vmem:[%s679_s1] sm:$0xff]  ;;  %s217_s11 = scalar_select %p216_p10, %s590_s22, 1  ;;  %vm243_vm0 = vcmask 261120   ;;  %vm298_vm1 = vcmask 523264  }
  0x14   : > { %253 = vmatpush.bf16.msra.mxu0 %v429_v0  ;;  %306 = vmatpush.bf16.msra.mxu1 %v433_v1  ;;  %v432_v3 = vld [vmem:[%s681_s3 + $0x10] sm:$0xff]  ;;  %v431_v6 = vld [vmem:[%s681_s3 + $0x8] sm:$0xff]  ;;  %v430_v7 = vld [vmem:[%s681_s3] sm:$0xff]  ;;  %vm315_vm2 = vcmask 130048   ;;  %s318_s22 = scalar_lea.sflag [#allocation3], %s213_s8  ;;  %p492_p11 = scmp.ne.s32.totalorder %s490_s25, %s491_s26 }
  0x15   : > { %s397_s14 = sshll.u32 %s217_s11, 3  ;;  %v473_v8 = vld [vmem:[%s680_s2] ss:$0 sm:$0xff]  ;;  %p497_p1 = scmp.lt.s32.totalorder %s495_s7, %s491_s26 }
  0x16   : > { %s219_s17 = scalar_lea.vmem %s678_s0, %s397_s14  ;;  %v474_v14 = vld [vmem:[%s682_s4] ss:$0 sm:$0xff]  ;;  %p493_p12 = pnand %p492_p11, %p607_p5 }
  0x17   : > { %v221_v4 = vld [vmem:[%s219_s17] sm:$0xff]  ;;  %s330_s17 = sshll.u32 %s215_s16, 4  ;;  %p498_p2 = por %p497_p1, %p496_p0  ;;  %s331_s17 = int_to_ptr.vmem [resolvable:$true] %s330_s17 }
  0x18   : > { %254 = vmatpush.bf16.msra.mxu0 %v428_v2  ;;  %307 = vmatpush.bf16.msra.mxu1 %v432_v3  ;;  %v222_v5 = vpack.c.bf16 %v221_v4, %v221_v4  ;;  %p494_p13 = pneg %p493_p12 }
  0x1a   : > { %p499_p3 = pnand %p498_p2, %p494_p13 }
  0x1b   : > { %406 = vmatmul.msk.bf16.vlgmr.msra.gmra.mxu0 %vm243_vm0, %v222_v5 }
  0x1c   : > { %308 = vmatpush.bf16.msra.mxu1 %v431_v6 }
  0x20   : > { %309 = vmatpush.bf16.msra.mxu1 %v430_v7 }
  0x98   : > { %v256_v9 = vpop.f32.mrf.mxu0 }
  0x99   : > { %v257_v10 = vadd.f32 %v473_v8, %v256_v9 }
  0x9b   : > { %v260_v11 = vmax.f32 %v257_v10, 0.0 }
  0x9d   : > { %v261_v12 = vpack.c.bf16 %v260_v11, %v260_v11 }
  0x9f   : > { %423 = vmatmul.msk.bf16.vlgmr.msra.gmra.mxu1 %vm298_vm1, %v261_v12 }
  0xa0   : > { %v258_v13 = vpop.f32.mrf.mxu0 }
 0x11c   : > { %v311_v15 = vpop.f32.mrf.mxu1 }
 0x11d   : > { %v312_v16 = vadd.f32 %v474_v14, %v311_v15 }
 0x11f   : > { %316 = vst.msk [vmem:[%s215_s16] sm:$0xff] %vm315_vm2, %v312_v16 }
 0x120   : > { %502 = shalt.err (!%p499_p3)
}
 0x121   : > { %434 = dma.vmem_to_hbm [thread:$0]  (%p607_p5), %s331_s17, 128, %s333_s23, %s318_s22  }
 0x124   : > { %v313_v17 = vpop.f32.mrf.mxu1 }
 0x125 PF: > { %p440_p4 = scmp.ge.s32.totalorder %s537_s21, 2  ;;  %s344_s8 = sand.u32 1, %s525_s18  }
 0x126   : > { %s345_s11 = scalar_lea.sflag [#allocation3], %s344_s8 }
 0x127   : > { %p437_p7 = pnand %p440_p4, %p611_p6 }
 0x129   : > { %p438_p8 = pneg %p437_p7 }
 0x12b   : > { %520 = dma.done.wait (%p438_p8), %s345_s11, 128  }
 0x12c   : > { %522 = vsyncadd (%p438_p8), %s345_s11, 4294967168  ;;  %p15_p9 = scmp.ge.s32.totalorder %s594_s24, 4   ;;  %s686_s18 = smov %s529_s19 }
 0x12d   : > { %s687_s19 = smov %s533_s20  ;;  %s688_s20 = smov %s605_s27 }
 0x12e   : > { %s689_s21 = smov %s594_s24  ;;  %17 = sbr.rel (!%p15_p9) target bundleno = 3 (0x3), region = 75 }
 0x133   :  { %351 = vsyncpa [#allocation3], 1 }
 0x134   :  { %353 = vsyncpa [#allocation3 + $0x1], 1 }

</bundles_post_ra>
